<compile_context>
chip_gen: v7x
topology: tpu7x:2x2x1
jax: 0.10.0
libtpu: 0.0.40
codegen_flags: <defaults>
</compile_context>

<pallas_src>
import jax
import jax.numpy as jnp
from jax.experimental import pallas as pl
from jax.experimental.pallas import tpu as pltpu

_LANE = 128
_SUBLANE = 8
_TARGET_BLOCK_BYTES = 4 * 1024 * 1024  # ~4 MiB per block (2-8 MiB sweet spot)


def _sigmoid_kernel(x_ref, o_ref):
    x = x_ref[...]
    # sigmoid(x) = 1 / (1 + exp(-x)); exp -> EUP, reciprocal -> EUP/Newton.
    e = jnp.exp(-x)
    o_ref[...] = pl.reciprocal(1.0 + e, approx=False)


def _choose_layout(total: int, itemsize: int):
    """Pick (cols, rows, tile_r, padded_total) for a lane-dense, big-block slab."""
    # Wide multiple-of-128 last dim -> unmasked wide vst + efficient DMA.
    cols = 1024 if total >= 1024 else _LANE
    # Keep the sublane (row) dim a multiple of 8 by padding the flat array.
    row_quantum = cols * _SUBLANE
    padded_total = pl.cdiv(total, row_quantum) * row_quantum
    rows = padded_total // cols  # multiple of 8
    # Rows per block, targeting ~_TARGET_BLOCK_BYTES, multiple of 8, <= rows.
    tile_r = max(_SUBLANE, min(rows, _TARGET_BLOCK_BYTES // (cols * itemsize)))
    tile_r = max(_SUBLANE, (tile_r // _SUBLANE) * _SUBLANE)
    return cols, rows, tile_r, padded_total


def sigmoid_pallas(x: jax.Array) -> jax.Array:
    """Elementwise sigmoid via a Pallas TPU kernel. Accepts any shape."""
    orig_shape = x.shape
    total = x.size
    itemsize = jnp.dtype(x.dtype).itemsize

    cols, rows, tile_r, padded_total = _choose_layout(total, itemsize)

    flat = x.reshape(-1)
    if padded_total != total:
        flat = jnp.pad(flat, (0, padded_total - total))
    x2d = flat.reshape(rows, cols)

    grid = (pl.cdiv(rows, tile_r),)  # ragged last block handled by Pallas

    # in + out, double buffered => ~4 * block_bytes; leave headroom but stay
    # well under v7x's 64 MiB physical VMEM.
    block_bytes = tile_r * cols * itemsize
    vmem_limit = int(min(96 * 1024 * 1024, max(32 * 1024 * 1024, 6 * block_bytes)))

    out2d = pl.pallas_call(
        _sigmoid_kernel,
        out_shape=jax.ShapeDtypeStruct((rows, cols), x.dtype),
        grid_spec=pltpu.PrefetchScalarGridSpec(
            num_scalar_prefetch=0,
            grid=grid,
            in_specs=[pl.BlockSpec((tile_r, cols), lambda i: (i, 0))],
            out_specs=pl.BlockSpec((tile_r, cols), lambda i: (i, 0)),
        ),
        compiler_params=pltpu.CompilerParams(
            dimension_semantics=("parallel",),  # shards across v7x's 2 TCs
            vmem_limit_bytes=vmem_limit,
        ),
    )(x2d)

    out_flat = out2d.reshape(-1)
    if padded_total != total:
        out_flat = out_flat[:total]
    return out_flat.reshape(orig_shape)


if __name__ == "__main__":
    key = jax.random.PRNGKey(0)

    # Small NCHW input consistent with the module's usage.
    x = jax.random.normal(key, (2, 4, 16, 16), dtype=jnp.float32)
    out = jax.block_until_ready(sigmoid_pallas(x))
    ref = jax.nn.sigmoid(x)
    assert out.shape == x.shape and out.dtype == x.dtype
    assert jnp.allclose(out, ref, atol=1e-6, rtol=1e-6)

    # The literal tensor from the original script, reshaped to (-1, 1, 2, 2).
    inp = jnp.array([[1.0, -0.5], [-1.0, 3.0]], dtype=jnp.float32).reshape(-1, 1, 2, 2)
    out_small = jax.block_until_ready(sigmoid_pallas(inp))
    assert jnp.allclose(out_small, jax.nn.sigmoid(inp), atol=1e-6)

    # Awkward (non-multiple-of-128) shape to exercise the padded / ragged path.
    x_odd = jax.random.normal(jax.random.PRNGKey(1), (3, 5, 7, 11), dtype=jnp.float32)
    out_odd = jax.block_until_ready(sigmoid_pallas(x_odd))
    assert jnp.allclose(out_odd, jax.nn.sigmoid(x_odd), atol=1e-6, rtol=1e-6)

    print("KERNEL_OK")
</pallas_src>

<mosaic_0001>
module attributes {stable_mosaic.version = 11 : i64} {
  func.func @_sigmoid_kernel(%arg0: i32, %arg1: memref<8x1024xf32, #tpu.memory_space<vmem>>, %arg2: memref<8x1024xf32, #tpu.memory_space<vmem>>) attributes {dimension_semantics = [#tpu.dimension_semantics<parallel>], iteration_bounds = array<i64: 1>, scalar_prefetch = 0 : i64, scratch_operands = 0 : i64, tpu.core_type = #tpu.core_type<tc>, window_params = [{transform_indices = @transform_0, window_bounds = array<i64: 8, 1024>}, {transform_indices = @transform_1, window_bounds = array<i64: 8, 1024>}]} {
    %c0 = arith.constant 0 : index
    %c0_0 = arith.constant 0 : index
    %0 = vector.load %arg1[%c0, %c0_0] : memref<8x1024xf32, #tpu.memory_space<vmem>>, vector<8x1024xf32>
    %cst = arith.constant 0.000000e+00 : f32
    %1 = vector.broadcast %cst : f32 to vector<8x1024xf32>
    %2 = arith.subf %1, %0 : vector<8x1024xf32>
    %3 = math.exp %2 : vector<8x1024xf32>
    %cst_1 = arith.constant 1.000000e+00 : f32
    %4 = vector.broadcast %cst_1 : f32 to vector<8x1024xf32>
    %5 = arith.addf %4, %3 : vector<8x1024xf32>
    %6 = tpu.reciprocal %5 : vector<8x1024xf32> -> vector<8x1024xf32>
    %c0_2 = arith.constant 0 : index
    %c0_3 = arith.constant 0 : index
    %7 = vector.load %arg2[%c0_2, %c0_3] : memref<8x1024xf32, #tpu.memory_space<vmem>>, vector<8x1024xf32>
    tpu.vector_store %arg2[%c0_2, %c0_3], %6 {strides = array<i32>} : memref<8x1024xf32, #tpu.memory_space<vmem>>, vector<8x1024xf32>,
    return
  }
  func.func @transform_0(%arg0: i32) -> (i32, i32) {
    %c0_i32 = arith.constant 0 : i32
    %c0_i32_0 = arith.constant 0 : i32
    return %arg0, %c0_i32 : i32, i32
  }
  func.func @transform_1(%arg0: i32) -> (i32, i32) {
    %c0_i32 = arith.constant 0 : i32
    %c0_i32_0 = arith.constant 0 : i32
    return %arg0, %c0_i32 : i32, i32
  }
}

</mosaic_0001>

<bundles_post_ra>
// kernel: tpu_custom_call.1
= control target key start
LH: loop header
LB: loop body
LE: loop exit
PB: predicated region body
PF: predicated region fallthrough
CT: control target
= control target key end

     0   :  { %6 = vsyncpa [#allocation3], 0  ;;  %s210_s0 = inlined_call_operand.hbm [shape: f32[8,1024], index: 0, kind: input, shape index: {}]   ;;  %s211_s1 = inlined_call_operand.hbm [shape: f32[8,1024], index: 1, kind: output, shape index: {}]  }
   0x1   :  { %7 = vsyncpa [#allocation4], 0  ;;  %s174_s6 = smov [#allocation2]   ;;  %s126_s10 = scalar_lea.hbm %s210_s0, 1024 }
   0x2   :  { %s14_s7 = sshll.u32 %s174_s6, 4  ;;  %p127_p0 = scmp.ne.s32.totalorder %s210_s0, %s126_s10  ;;  %s15_s7 = int_to_ptr.vmem [resolvable:$true] %s14_s7 }
   0x3   :  { %p130_p1 = scmp.lt.u32.totalorder %s126_s10, %s210_s0 }
   0x5   :  { %p132_p2 = pnand %p130_p1, %p127_p0 }
   0x7   :  { %135 = shalt.err (!%p132_p2)
}
   0x8   :  { %s136_s15 = scalar_lea.vmem %s15_s7, 1024  ;;  %p141_p4 = scmp.lt.s32.totalorder %s15_s7, %s15_s7 }
   0x9   :  { %p137_p3 = scmp.ne.s32.totalorder %s15_s7, %s136_s15  ;;  %p142_p5 = scmp.lt.s32.totalorder %s136_s15, %s136_s15 }
   0xb   :  { %p143_p6 = por %p142_p5, %p141_p4 }
   0xd   :  { %p144_p7 = pnand %p143_p6, %p137_p3 }
   0xf   :  { %147 = shalt.err (!%p144_p7)
}
  0x10   :  { %17 = dma.hbm_to_vmem [thread:$0]  %s210_s0, 1024, %s15_s7, [#allocation3]  }
  0x11   :  { %170 = dma.done.wait [#allocation3], 1024  }
  0x12   :  { %171 = vsyncadd [#allocation3], 4294966272  ;;  %v21_v0 = vld [vmem:[#allocation2] sm:$0xff]  ;;  %v22_v1 = vld [vmem:[#allocation2 + $0x8] sm:$0xff]  ;;  %s175_s0 = smov [#allocation5]  }
  0x13   :  { %v23_v2 = vld [vmem:[#allocation2 + $0x10] sm:$0xff]  ;;  %v29_v3 = vsub.f32 0.0, %v21_v0  ;;  %v30_v4 = vsub.f32 0.0, %v22_v1  ;;  %v24_v6 = vld [vmem:[#allocation2 + $0x18] sm:$0xff]  ;;  %v25_v7 = vld [vmem:[#allocation2 + $0x20] sm:$0xff]  ;;  %s83_s18 = sshll.u32 %s175_s0, 4  ;;  %s84_s18 = int_to_ptr.vmem [resolvable:$true] %s83_s18 }
  0x14   :  { %v31_v5 = vsub.f32 0.0, %v23_v2  ;;  %v26_v8 = vld [vmem:[#allocation2 + $0x28] sm:$0xff]  ;;  %v32_v9 = vsub.f32 0.0, %v24_v6  ;;  %v33_v10 = vsub.f32 0.0, %v25_v7  ;;  %v27_v12 = vld [vmem:[#allocation2 + $0x30] sm:$0xff]  ;;  %v28_v13 = vld [vmem:[#allocation2 + $0x38] sm:$0xff]  ;;  %p153_p9 = scmp.lt.s32.totalorder %s84_s18, %s84_s18 }
  0x15   :  { %v34_v11 = vsub.f32 0.0, %v26_v8  ;;  %v37_v14 = vmul.f32 1.442695, %v29_v3  ;;  %v39_v15 = vmul.f32 1.442695, %v30_v4  ;;  %v35_v19 = vsub.f32 0.0, %v27_v12 }
  0x16   :  { %v41_v16 = vmul.f32 1.442695, %v31_v5  ;;  %v43_v17 = vmul.f32 1.442695, %v32_v9  ;;  %v45_v18 = vmul.f32 1.442695, %v33_v10 }
  0x17   :  { %94 = vpow2.f32 %v37_v14  ;;  %v36_v20 = vsub.f32 0.0, %v28_v13  ;;  %v47_v21 = vmul.f32 1.442695, %v34_v11  ;;  %v49_v22 = vmul.f32 1.442695, %v35_v19  ;;  %s148_s19 = scalar_lea.vmem %s84_s18, 1024 }
  0x18   :  { %96 = vpow2.f32 %v39_v15  ;;  %p149_p8 = scmp.ne.s32.totalorder %s84_s18, %s148_s19  ;;  %p154_p10 = scmp.lt.s32.totalorder %s148_s19, %s148_s19 }
  0x19   :  { %98 = vpow2.f32 %v41_v16  ;;  %v51_v23 = vmul.f32 1.442695, %v36_v20 }
  0x1a   :  { %100 = vpow2.f32 %v43_v17  ;;  %p155_p11 = por %p154_p10, %p153_p9 }
  0x1b   :  { %102 = vpow2.f32 %v45_v18 }
  0x1c   :  { %104 = vpow2.f32 %v47_v21  ;;  %p156_p12 = pnand %p155_p11, %p149_p8 }
  0x1d   :  { %106 = vpow2.f32 %v49_v22 }
  0x1e   :  { %108 = vpow2.f32 %v51_v23 }
  0x21   :  { %v95_v24 = vpop.eup %94 }
  0x22   :  { %v97_v25 = vpop.eup %96  ;;  %v53_v26 = vadd.f32 1.0, %v95_v24 }
  0x23   :  { %v99_v27 = vpop.eup %98  ;;  %v54_v28 = vadd.f32 1.0, %v97_v25 }
  0x24   :  { %v101_v29 = vpop.eup %100  ;;  %110 = vrcp.f32 %v53_v26  ;;  %v55_v30 = vadd.f32 1.0, %v99_v27 }
  0x25   :  { %v103_v31 = vpop.eup %102  ;;  %112 = vrcp.f32 %v54_v28  ;;  %v56_v32 = vadd.f32 1.0, %v101_v29 }
  0x26   :  { %v105_v33 = vpop.eup %104  ;;  %114 = vrcp.f32 %v55_v30  ;;  %v57_v34 = vadd.f32 1.0, %v103_v31 }
  0x27   :  { %v107_v35 = vpop.eup %106  ;;  %116 = vrcp.f32 %v56_v32  ;;  %v58_v36 = vadd.f32 1.0, %v105_v33 }
  0x28   :  { %v109_v37 = vpop.eup %108  ;;  %118 = vrcp.f32 %v57_v34  ;;  %v59_v38 = vadd.f32 1.0, %v107_v35 }
  0x29   :  { %120 = vrcp.f32 %v58_v36  ;;  %v60_v39 = vadd.f32 1.0, %v109_v37 }
  0x2a   :  { %122 = vrcp.f32 %v59_v38 }
  0x2b   :  { %124 = vrcp.f32 %v60_v39 }
  0x2e   :  { %v111_v40 = vpop.eup %110 }
  0x2f   :  { %v113_v41 = vpop.eup %112  ;;  %69 = vst [vmem:[#allocation5] sm:$0xff] %v111_v40 }
  0x30   :  { %v115_v42 = vpop.eup %114  ;;  %70 = vst [vmem:[#allocation5 + $0x8] sm:$0xff] %v113_v41 }
  0x31   :  { %v117_v43 = vpop.eup %116  ;;  %71 = vst [vmem:[#allocation5 + $0x10] sm:$0xff] %v115_v42 }
  0x32   :  { %v119_v44 = vpop.eup %118  ;;  %72 = vst [vmem:[#allocation5 + $0x18] sm:$0xff] %v117_v43 }
  0x33   :  { %v121_v45 = vpop.eup %120  ;;  %73 = vst [vmem:[#allocation5 + $0x20] sm:$0xff] %v119_v44 }
  0x34   :  { %v123_v46 = vpop.eup %122  ;;  %74 = vst [vmem:[#allocation5 + $0x28] sm:$0xff] %v121_v45 }
  0x35   :  { %v125_v47 = vpop.eup %124  ;;  %75 = vst [vmem:[#allocation5 + $0x30] sm:$0xff] %v123_v46 }
  0x36   :  { %76 = vst [vmem:[#allocation5 + $0x38] sm:$0xff] %v125_v47 }
  0x37   :  { %159 = shalt.err (!%p156_p12)
}
  0x38   :  { %s160_s22 = scalar_lea.hbm %s211_s1, 1024 }
  0x39   :  { %p161_p13 = scmp.ne.s32.totalorder %s211_s1, %s160_s22  ;;  %p164_p0 = scmp.lt.u32.totalorder %s160_s22, %s211_s1 }
  0x3b   :  { %p166_p1 = pnand %p164_p0, %p161_p13 }
  0x3d   :  { %169 = shalt.err (!%p166_p1)
}
  0x3e   :  { %86 = dma.vmem_to_hbm [thread:$0]  %s84_s18, 1024, %s211_s1, [#allocation4]  }
  0x3f   :  { %172 = dma.done.wait [#allocation4], 1024  }
  0x40   :  { %173 = vsyncadd [#allocation4], 4294966272 }
  0x41   :  { %90 = vsyncpa [#allocation3], 1 }
  0x42   :  { %91 = vsyncpa [#allocation4], 1 }

</bundles_post_ra>
